<compile_context>
chip_gen: v6e
topology: v6e:2x2x1
jax: 0.10.0
libtpu: 0.0.40
codegen_flags: <defaults>
</compile_context>

<pallas_src>
import functools
import math

import jax
import jax.numpy as jnp
from jax import lax
from jax.experimental import pallas as pl
from jax.experimental.pallas import tpu as pltpu

# Safe on every current TPU generation (v5e/v6e: 128 MiB physical, v7x: 64 MiB);
# the tiles below are sized so the double-buffered working set stays well under it.
_VMEM_LIMIT_BYTES = 32 * 1024 * 1024


def _pick_tile_m(n, cap=512):
    """Largest multiple-of-8 divisor of n that is <= cap (falls back to one block)."""
    if n <= cap:
        return n
    for tm in range(cap - cap % 8, 0, -8):
        if n % tm == 0:
            return tm
    return n  # no clean divisor: single full block (always a legal block shape)


# ---------------------------------------------------------------------------
# Kernel 1: fused QKV projection   [q | k | v] = x @ W_qkv + b_qkv
# ---------------------------------------------------------------------------
def _qkv_proj_kernel(x_ref, w_ref, b_ref, q_ref, k_ref, v_ref):
    h = q_ref.shape[-1]
    acc = jnp.dot(x_ref[...], w_ref[...], preferred_element_type=jnp.float32)
    acc = acc + b_ref[...]                                   # bias add in f32
    q_ref[...] = acc[:, :h].astype(q_ref.dtype)
    k_ref[...] = acc[:, h:2 * h].astype(k_ref.dtype)
    v_ref[...] = acc[:, 2 * h:].astype(v_ref.dtype)


def fused_qkv_projection(x2d, w_qkv, b_qkv, *, out_dtype=jnp.bfloat16, tile_m_cap=512):
    """x2d: (N, H); w_qkv: (H, 3H); b_qkv: (1, 3H)  ->  (q, k, v), each (N, H)."""
    n, h_in = x2d.shape
    h3 = w_qkv.shape[1]
    h = h3 // 3
    tm = _pick_tile_m(n, tile_m_cap)
    out_sd = jax.ShapeDtypeStruct((n, h), out_dtype)
    out_spec = pl.BlockSpec((tm, h), lambda i: (i, 0))
    return pl.pallas_call(
        _qkv_proj_kernel,
        grid=(n // tm,),
        in_specs=[
            pl.BlockSpec((tm, h_in), lambda i: (i, 0)),      # activation tile (pipelined)
            pl.BlockSpec((h_in, h3), lambda i: (0, 0)),      # weight resident in VMEM
            pl.BlockSpec((1, h3), lambda i: (0, 0)),         # bias resident
        ],
        out_specs=(out_spec, out_spec, out_spec),
        out_shape=(out_sd, out_sd, out_sd),
        compiler_params=pltpu.CompilerParams(
            dimension_semantics=("parallel",),
            vmem_limit_bytes=_VMEM_LIMIT_BYTES),
    )(x2d, w_qkv, b_qkv)


# ---------------------------------------------------------------------------
# Kernel 2: per-batch multi-head attention (all heads of one batch per step)
# ---------------------------------------------------------------------------
def _mha_kernel(q_ref, k_ref, v_ref, mask_ref, o_ref, *, num_heads):
    seq, h = q_ref.shape
    hd = h // num_heads
    mask = mask_ref[...]                 # (1, S) additive mask, f32
    q = q_ref[...]                       # (S, H) bf16; already scaled by 1/sqrt(hd)
    k = k_ref[...]
    v = v_ref[...]

    ctx_heads = []
    for head in range(num_heads):        # all heads of this batch in one grid step
        lo = head * hd
        qh = q[:, lo:lo + hd]
        kh = k[:, lo:lo + hd]
        vh = v[:, lo:lo + hd]
        # q_h @ k_h^T on the MXU without materializing a transpose of k_h.
        s = lax.dot_general(qh, kh, (((1,), (1,)), ((), ())),
                            preferred_element_type=jnp.float32)          # (S, S) f32
        s = s + mask                                                      # broadcast over queries
        s = s - jnp.max(s, axis=-1, keepdims=True)                        # stable softmax
        p = jnp.exp(s)
        denom = jnp.sum(p, axis=-1, keepdims=True)                        # (S, 1)
        ctx = jnp.dot(p.astype(vh.dtype), vh,
                      preferred_element_type=jnp.float32)                 # (S, hd)
        # Deferred normalization on the small (S, hd) tile; reciprocal goes to the EUP.
        ctx_heads.append(ctx * pl.reciprocal(denom, approx=True))

    # Single lane-dense (S, H) store per grid step.
    o_ref[...] = jnp.concatenate(ctx_heads, axis=-1).astype(o_ref.dtype)
    # TODO(synk): attention-probs dropout is identity here (eval/inference mode).
    # TODO(synk): for long sequences (S >~ 1-2k) tile the KV axis with an online
    # softmax (flash pattern) instead of materializing the full (S, S) scores.


def pallas_mha(q, k, v, mask, num_heads, *, out_dtype=jnp.float32):
    """q, k, v: (B, S, H); mask: (B, 1, S) additive  ->  context (B, S, H)."""
    b, s, h = q.shape
    kernel = functools.partial(_mha_kernel, num_heads=num_heads)
    qkv_spec = pl.BlockSpec((pl.Squeezed(), s, h), lambda i: (i, 0, 0))
    mask_spec = pl.BlockSpec((pl.Squeezed(), 1, s), lambda i: (i, 0, 0))
    return pl.pallas_call(
        kernel,
        grid=(b,),
        in_specs=[qkv_spec, qkv_spec, qkv_spec, mask_spec],
        out_specs=pl.BlockSpec((pl.Squeezed(), s, h), lambda i: (i, 0, 0)),
        out_shape=jax.ShapeDtypeStruct((b, s, h), out_dtype),
        compiler_params=pltpu.CompilerParams(
            dimension_semantics=("parallel",),        # grid over B: splits across TCs on v7x
            vmem_limit_bytes=_VMEM_LIMIT_BYTES),
    )(q, k, v, mask)


# ---------------------------------------------------------------------------
# Full BertSelfAttention forward
# ---------------------------------------------------------------------------
def bert_self_attention(params, hidden_states, attention_mask, num_heads, *, tile_m=512):
    """hidden_states (S, B, H), attention_mask (B, 1, 1, S) -> (S, B, H)."""
    s, b, h = hidden_states.shape
    hd = h // num_heads
    scale = 1.0 / math.sqrt(hd)

    # Fold the 1/sqrt(hd) score scaling into the query projection (exact, zero runtime
    # cost) and fuse the three nn.Linear weights into one (H, 3H) bf16 matmul operand.
    w_qkv = jnp.concatenate(
        [params["wq"].T * scale, params["wk"].T, params["wv"].T], axis=1
    ).astype(jnp.bfloat16)
    b_qkv = jnp.concatenate(
        [params["bq"] * scale, params["bk"], params["bv"]]
    ).reshape(1, 3 * h).astype(jnp.float32)

    # One (S, B, H) -> (B, S, H) relayout (bf16 cast fused into the same copy);
    # replaces the three per-tensor head-split transposes of the original version.
    x = hidden_states.transpose(1, 0, 2).astype(jnp.bfloat16).reshape(b * s, h)

    q, k, v = fused_qkv_projection(x, w_qkv, b_qkv, tile_m_cap=tile_m)
    q = q.reshape(b, s, h)
    k = k.reshape(b, s, h)
    v = v.reshape(b, s, h)

    mask = attention_mask.reshape(b, 1, s).astype(jnp.float32)
    ctx = pallas_mha(q, k, v, mask, num_heads, out_dtype=hidden_states.dtype)  # (B, S, H)

    # context_layer.transpose(0, 1).view(S, B, H)
    return ctx.transpose(1, 0, 2)


# ---------------------------------------------------------------------------
# Pure-JAX f32 reference (for a loose correctness check of the bf16 kernels)
# ---------------------------------------------------------------------------
def _reference_self_attention(params, hidden_states, attention_mask, num_heads):
    s, b, h = hidden_states.shape
    hd = h // num_heads
    q = hidden_states @ params["wq"].T + params["bq"]
    k = hidden_states @ params["wk"].T + params["bk"]
    v = hidden_states @ params["wv"].T + params["bv"]

    def split(t):  # (S, B, H) -> (B, nh, S, hd)
        return t.reshape(s, b, num_heads, hd).transpose(1, 2, 0, 3)

    qh, kh, vh = split(q), split(k), split(v)
    scores = jnp.einsum("bhqd,bhkd->bhqk", qh, kh) / math.sqrt(hd)
    scores = scores + attention_mask
    probs = jax.nn.softmax(scores, axis=-1)
    ctx = jnp.einsum("bhqk,bhkd->bhqd", probs, vh)
    return ctx.transpose(2, 0, 1, 3).reshape(s, b, h)


# ---------------------------------------------------------------------------
if __name__ == "__main__":
    S, B, H, NH = 8, 2, 32, 4       # seq, batch, hidden, heads (hd = 8)

    key = jax.random.PRNGKey(0)
    ks = jax.random.split(key, 8)

    # PyTorch nn.Linear shapes: W (out, in), b (out,)
    params = {
        "wq": 0.02 * jax.random.normal(ks[0], (H, H), jnp.float32),
        "bq": 0.02 * jax.random.normal(ks[1], (H,), jnp.float32),
        "wk": 0.02 * jax.random.normal(ks[2], (H, H), jnp.float32),
        "bk": 0.02 * jax.random.normal(ks[3], (H,), jnp.float32),
        "wv": 0.02 * jax.random.normal(ks[4], (H, H), jnp.float32),
        "bv": 0.02 * jax.random.normal(ks[5], (H,), jnp.float32),
    }

    hidden_states = jax.random.normal(ks[6], (S, B, H), jnp.float32)   # (S, B, H)

    # Additive attention mask: batch 0 fully valid, batch 1 has 2 padded tokens.
    lengths = jnp.array([S, S - 2])
    valid = (jnp.arange(S)[None, :] < lengths[:, None]).astype(jnp.float32)
    attention_mask = ((1.0 - valid) * -10000.0).reshape(B, 1, 1, S)

    out = bert_self_attention(params, hidden_states, attention_mask, NH)
    jax.block_until_ready(out)
    assert out.shape == (S, B, H)

    # Loose tolerance: bf16 MXU operands + approx reciprocal vs. the f32 reference.
    ref = _reference_self_attention(params, hidden_states, attention_mask, NH)
    max_err = float(jnp.max(jnp.abs(out - ref)))
    assert max_err < 5e-2, f"max abs err {max_err}"

    print("KERNEL_OK")
</pallas_src>

<mosaic_0001>
module attributes {stable_mosaic.version = 11 : i64} {
  func.func @_qkv_proj_kernel(%arg0: i32, %arg1: memref<16x32xbf16, #tpu.memory_space<vmem>>, %arg2: memref<32x96xbf16, #tpu.memory_space<vmem>>, %arg3: memref<1x96xf32, #tpu.memory_space<vmem>>, %arg4: memref<16x32xbf16, #tpu.memory_space<vmem>>, %arg5: memref<16x32xbf16, #tpu.memory_space<vmem>>, %arg6: memref<16x32xbf16, #tpu.memory_space<vmem>>) attributes {dimension_semantics = [#tpu.dimension_semantics<parallel>], iteration_bounds = array<i64: 1>, scalar_prefetch = 0 : i64, scratch_operands = 0 : i64, tpu.core_type = #tpu.core_type<tc>, window_params = [{transform_indices = @transform_0, window_bounds = array<i64: 16, 32>}, {pipeline_mode = #tpu.pipeline_mode<synchronous>, transform_indices = @transform_1, window_bounds = array<i64: 32, 96>}, {pipeline_mode = #tpu.pipeline_mode<synchronous>, transform_indices = @transform_2, window_bounds = array<i64: 1, 96>}, {transform_indices = @transform_3, window_bounds = array<i64: 16, 32>}, {transform_indices = @transform_4, window_bounds = array<i64: 16, 32>}, {transform_indices = @transform_5, window_bounds = array<i64: 16, 32>}]} {
    %c0 = arith.constant 0 : index
    %c0_0 = arith.constant 0 : index
    %0 = vector.load %arg1[%c0, %c0_0] : memref<16x32xbf16, #tpu.memory_space<vmem>>, vector<16x32xbf16>
    %c0_1 = arith.constant 0 : index
    %c0_2 = arith.constant 0 : index
    %1 = vector.load %arg2[%c0_1, %c0_2] : memref<32x96xbf16, #tpu.memory_space<vmem>>, vector<32x96xbf16>
    %cst = arith.constant dense<0.000000e+00> : vector<16x96xf32>
    %2 = tpu.matmul %0, %1, %cst {dimension_numbers = #tpu.dot_dimension_numbers<[1], [0], [0], [1], [0, 0, 1, 1], [], []>} : vector<16x32xbf16>, vector<32x96xbf16>, vector<16x96xf32> -> vector<16x96xf32>
    %c0_3 = arith.constant 0 : index
    %c0_4 = arith.constant 0 : index
    %3 = vector.load %arg3[%c0_3, %c0_4] : memref<1x96xf32, #tpu.memory_space<vmem>>, vector<1x96xf32>
    %4 = vector.broadcast %3 : vector<1x96xf32> to vector<16x96xf32>
    %5 = arith.addf %2, %4 : vector<16x96xf32>
    %6 = vector.extract_strided_slice %5 {offsets = [0, 0], sizes = [16, 32], strides = [1, 1]} : vector<16x96xf32> to vector<16x32xf32>
    %7 = arith.truncf %6 : vector<16x32xf32> to vector<16x32xbf16>
    %c0_5 = arith.constant 0 : index
    %c0_6 = arith.constant 0 : index
    %8 = vector.load %arg4[%c0_5, %c0_6] : memref<16x32xbf16, #tpu.memory_space<vmem>>, vector<16x32xbf16>
    tpu.vector_store %arg4[%c0_5, %c0_6], %7 {strides = array<i32>} : memref<16x32xbf16, #tpu.memory_space<vmem>>, vector<16x32xbf16>,
    %9 = vector.extract_strided_slice %5 {offsets = [0, 32], sizes = [16, 32], strides = [1, 1]} : vector<16x96xf32> to vector<16x32xf32>
    %10 = arith.truncf %9 : vector<16x32xf32> to vector<16x32xbf16>
    %c0_7 = arith.constant 0 : index
    %c0_8 = arith.constant 0 : index
    %11 = vector.load %arg5[%c0_7, %c0_8] : memref<16x32xbf16, #tpu.memory_space<vmem>>, vector<16x32xbf16>
    tpu.vector_store %arg5[%c0_7, %c0_8], %10 {strides = array<i32>} : memref<16x32xbf16, #tpu.memory_space<vmem>>, vector<16x32xbf16>,
    %12 = vector.extract_strided_slice %5 {offsets = [0, 64], sizes = [16, 32], strides = [1, 1]} : vector<16x96xf32> to vector<16x32xf32>
    %13 = arith.truncf %12 : vector<16x32xf32> to vector<16x32xbf16>
    %c0_9 = arith.constant 0 : index
    %c0_10 = arith.constant 0 : index
    %14 = vector.load %arg6[%c0_9, %c0_10] : memref<16x32xbf16, #tpu.memory_space<vmem>>, vector<16x32xbf16>
    tpu.vector_store %arg6[%c0_9, %c0_10], %13 {strides = array<i32>} : memref<16x32xbf16, #tpu.memory_space<vmem>>, vector<16x32xbf16>,
    return
  }
  func.func @transform_0(%arg0: i32) -> (i32, i32) {
    %c0_i32 = arith.constant 0 : i32
    %c0_i32_0 = arith.constant 0 : i32
    return %arg0, %c0_i32 : i32, i32
  }
  func.func @transform_1(%arg0: i32) -> (i32, i32) {
    %c0_i32 = arith.constant 0 : i32
    %c0_i32_0 = arith.constant 0 : i32
    %c0_i32_1 = arith.constant 0 : i32
    return %c0_i32, %c0_i32_0 : i32, i32
  }
  func.func @transform_2(%arg0: i32) -> (i32, i32) {
    %c0_i32 = arith.constant 0 : i32
    %c0_i32_0 = arith.constant 0 : i32
    %c0_i32_1 = arith.constant 0 : i32
    return %c0_i32, %c0_i32_0 : i32, i32
  }
  func.func @transform_3(%arg0: i32) -> (i32, i32) {
    %c0_i32 = arith.constant 0 : i32
    %c0_i32_0 = arith.constant 0 : i32
    return %arg0, %c0_i32 : i32, i32
  }
  func.func @transform_4(%arg0: i32) -> (i32, i32) {
    %c0_i32 = arith.constant 0 : i32
    %c0_i32_0 = arith.constant 0 : i32
    return %arg0, %c0_i32 : i32, i32
  }
  func.func @transform_5(%arg0: i32) -> (i32, i32) {
    %c0_i32 = arith.constant 0 : i32
    %c0_i32_0 = arith.constant 0 : i32
    return %arg0, %c0_i32 : i32, i32
  }
}

</mosaic_0001>

<bundles_post_ra>
// kernel: tpu_custom_call.1
= control target key start
LH: loop header
LB: loop body
LE: loop exit
PB: predicated region body
PF: predicated region fallthrough
CT: control target
= control target key end

     0   :  { %11 = vsyncpa [#allocation3], 0  ;;  %s421_s0 = inlined_call_operand.hbm [shape: bf16[16,32], index: 0, kind: input, shape index: {}]   ;;  %s422_s1 = inlined_call_operand.hbm [shape: bf16[32,96], index: 1, kind: input, shape index: {}]   ;;  %s423_s2 = inlined_call_operand.vmem [shape: f32[1,96], index: 2, kind: input, shape index: {}]   ;;  %s424_s3 = inlined_call_operand.hbm [shape: bf16[16,32], index: 3, kind: output, shape index: {0}]   ;;  %s425_s4 = inlined_call_operand.hbm [shape: bf16[16,32], index: 4, kind: output, shape index: {1}]   ;;  %s426_s5 = inlined_call_operand.hbm [shape: bf16[16,32], index: 5, kind: output, shape index: {2}]  }
   0x1   :  { %12 = vsyncpa [#allocation6], 0 }
   0x2   :  { %13 = vsyncpa [#allocation4], 0 }
   0x3   :  { %14 = vsyncpa [#allocation9], 0  ;;  %s340_s18 = smov [#allocation2]  }
   0x4   :  { %s20_s19 = sshll.u32 %s340_s18, 4  ;;  %s21_s19 = int_to_ptr.vmem [resolvable:$true] %s20_s19 }
   0x5   :  { %s240_s20 = scalar_lea.vmem %s21_s19, 128  ;;  %p245_p1 = scmp.lt.s32.totalorder %s21_s19, %s21_s19 }
   0x6   :  { %p241_p0 = scmp.ne.s32.totalorder %s21_s19, %s240_s20  ;;  %p246_p2 = scmp.lt.s32.totalorder %s240_s20, %s240_s20 }
   0x8   :  { %p247_p3 = por %p246_p2, %p245_p1 }
   0xa   :  { %p248_p4 = pnand %p247_p3, %p241_p0 }
   0xc   :  { %251 = shalt.err (!%p248_p4)
}
   0xd   :  { %s341_s21 = smov 64   ;;  %s342_s22 = smov 4  }
   0xe   :  { %26 = dma.hbm_to_vmem [thread:$0]  %s421_s0, 128, %s21_s19, [#allocation3], %s341_s21, %s341_s21, %s342_s22  }
   0xf   :  { %s343_s25 = smov [#allocation5]  }
  0x10   :  { %s32_s26 = sshll.u32 %s343_s25, 4  ;;  %s33_s26 = int_to_ptr.vmem [resolvable:$true] %s32_s26 }
  0x11   :  { %s260_s27 = scalar_lea.vmem %s33_s26, 256  ;;  %p265_p6 = scmp.lt.s32.totalorder %s33_s26, %s33_s26 }
  0x12   :  { %p261_p5 = scmp.ne.s32.totalorder %s33_s26, %s260_s27  ;;  %p266_p7 = scmp.lt.s32.totalorder %s260_s27, %s260_s27 }
  0x14   :  { %p267_p8 = por %p266_p7, %p265_p6 }
  0x16   :  { %p268_p9 = pnand %p267_p8, %p261_p5 }
  0x18   :  { %271 = shalt.err (!%p268_p9)
}
  0x19   :  { %38 = dma.hbm_to_vmem [thread:$0]  %s422_s1, 256, %s33_s26, [#allocation6], %s341_s21, %s341_s21, %s342_s22  }
  0x1a   :  { %332 = dma.done.wait [#allocation3], 128  }
  0x1b   :  { %333 = vsyncadd [#allocation3], 4294967168 }
  0x1c   :  { %334 = dma.done.wait [#allocation6], 256  }
  0x1d   :  { %335 = vsyncadd [#allocation6], 4294967040  ;;  %v344_v0 = vmov 0.0   ;;  %vm345_vm0 = vmmov 0   ;;  %v229_v1 = vld [vmem:[#allocation5 + $0x8] sm:$0xff]   ;;  %v230_v2 = vld [vmem:[#allocation5] sm:$0xff]  }
  0x1e   :  { %211 = vmatprep.subr.bf16.mxu0 %v344_v0  ;;  %215 = vmatprep.mubr.msk.bf16.mxu0 %vm345_vm0, %v344_v0  ;;  %v231_v3 = vld [vmem:[#allocation2] sm:$0xff]   ;;  %vm78_vm1 = vcmask 261120   ;;  %vm131_vm2 = vcmask 257024   ;;  %s346_s1 = smov [#allocation7]   ;;  %s347_s7 = smov 96  }
  0x1f   :  { %212 = vmatpush3.bf16.msra.mxu0 %v229_v1  ;;  %v199_v4 = vld [vmem:[%s423_s2] ss:$0 sm:$0xff]  ;;  %s155_s6 = sshll.u32 %s346_s1, 4  ;;  %s156_s6 = int_to_ptr.vmem [resolvable:$true] %s155_s6 }
  0x20   :  { %213 = vmatprep.subr.bf16.mxu0 %v344_v0  ;;  %s272_s2 = scalar_lea.vmem %s156_s6, 128  ;;  %p277_p11 = scmp.lt.s32.totalorder %s156_s6, %s156_s6 }
  0x21   :  { %p273_p10 = scmp.ne.s32.totalorder %s156_s6, %s272_s2  ;;  %p278_p12 = scmp.lt.s32.totalorder %s272_s2, %s272_s2 }
  0x23   :  { %214 = vmatpush3.bf16.msra.mxu0 %v230_v2  ;;  %p279_p13 = por %p278_p12, %p277_p11 }
  0x25   :  { %p280_p0 = pnand %p279_p13, %p273_p10 }
  0x26   :  { %216 = vmatmul.mubr.msk.bf16.vlgmr.msra.gmra.mxu0 %vm78_vm1, %v231_v3 }
  0xe6   :  { %v116_v5 = vpop.f32.mrf.mxu0 }
  0xe7   :  { %v117_v6 = vadd.f32 %v199_v4, %v116_v5 }
  0xe8   :  { %v217_v7 = vpop.f32.mrf.mxu0 }
  0xe9   :  { %v206_v8 = vpack.c.bf16 %v117_v6, %v117_v6 }
  0xea   :  { %v119_v9 = vpop.f32.mrf.mxu0 }
  0xeb   :  { %v120_v10 = vadd.f32 %v199_v4, %v119_v9  ;;  %142 = vrot.lane.b32.xlu1 %v206_v8, %s341_s21  ;;  %134 = vrot.lane.b32.xlu0 %v206_v8, %s347_s7  ;;  %132 = vst.msk [vmem:[#allocation7] sm:$0xf] %vm131_vm2, %v206_v8 }
  0xec   :  { %v218_v11 = vpop.f32.mrf.mxu0 }
  0xed   :  { %v207_v12 = vpack.c.bf16 %v120_v10, %v120_v10 }
  0xef   :  { %144 = vrot.lane.b32.xlu1 %v207_v12, %s341_s21  ;;  %136 = vrot.lane.b32.xlu0 %v207_v12, %s347_s7  ;;  %133 = vst.msk [vmem:[#allocation7 + $0x4] sm:$0xf] %vm131_vm2, %v207_v12 }
  0xf0   :  { %283 = shalt.err (!%p280_p0)
}
  0xf1   :  { %161 = dma.vmem_to_hbm [thread:$0]  %s156_s6, 128, %s424_s3, [#allocation4], %s341_s21, %s341_s21, %s342_s22  }
  0xf2   :  { %s348_s10 = smov [#allocation8]   ;;  %s349_s12 = smov [#allocation10]  }
  0xf3   :  { %s167_s11 = sshll.u32 %s348_s10, 4  ;;  %s179_s13 = sshll.u32 %s349_s12, 4  ;;  %s168_s11 = int_to_ptr.vmem [resolvable:$true] %s167_s11  ;;  %s180_s13 = int_to_ptr.vmem [resolvable:$true] %s179_s13 }
  0xf4   :  { %s292_s14 = scalar_lea.vmem %s168_s11, 128  ;;  %p297_p2 = scmp.lt.s32.totalorder %s168_s11, %s168_s11 }
  0xf5   :  { %p293_p1 = scmp.ne.s32.totalorder %s168_s11, %s292_s14  ;;  %p298_p3 = scmp.lt.s32.totalorder %s292_s14, %s292_s14 }
  0xf7   :  { %p299_p4 = por %p298_p3, %p297_p2 }
  0xf9   :  { %p300_p5 = pnand %p299_p4, %p293_p1 }
 0x15d   :  { %v143_v13 = vpop.permute.xlu1 %142  ;;  %v135_v14 = vpop.permute.xlu0 %134 }
 0x15e   :  { %148 = vst.msk [vmem:[#allocation10] sm:$0xf] %vm131_vm2, %v143_v13  ;;  %140 = vst.msk [vmem:[#allocation8] sm:$0xf] %vm131_vm2, %v135_v14 }
 0x161   :  { %v145_v15 = vpop.permute.xlu1 %144  ;;  %v137_v16 = vpop.permute.xlu0 %136 }
 0x162   :  { %149 = vst.msk [vmem:[#allocation10 + $0x4] sm:$0xf] %vm131_vm2, %v145_v15  ;;  %141 = vst.msk [vmem:[#allocation8 + $0x4] sm:$0xf] %vm131_vm2, %v137_v16 }
 0x163   :  { %303 = shalt.err (!%p300_p5)
}
 0x164   :  { %173 = dma.vmem_to_hbm [thread:$0]  %s168_s11, 128, %s425_s4, [#allocation9], %s341_s21, %s341_s21, %s342_s22  }
 0x165   :  { %s312_s16 = scalar_lea.vmem %s180_s13, 128  ;;  %p317_p7 = scmp.lt.s32.totalorder %s180_s13, %s180_s13 }
 0x166   :  { %p313_p6 = scmp.ne.s32.totalorder %s180_s13, %s312_s16  ;;  %p318_p8 = scmp.lt.s32.totalorder %s312_s16, %s312_s16 }
 0x168   :  { %p319_p9 = por %p318_p8, %p317_p7 }
 0x16a   :  { %p320_p10 = pnand %p319_p9, %p313_p6 }
 0x16c   :  { %323 = shalt.err (!%p320_p10)
}
 0x16d   :  { %185 = dma.vmem_to_hbm [thread:$0]  %s180_s13, 128, %s426_s5, [#allocation9], %s341_s21, %s341_s21, %s342_s22  }
 0x16e   :  { %336 = dma.done.wait [#allocation4], 128  }
 0x16f   :  { %337 = vsyncadd [#allocation4], 4294967168 }
 0x170   :  { %338 = dma.done.wait [#allocation9], 256  }
 0x171   :  { %339 = vsyncadd [#allocation9], 4294967040 }
 0x172   :  { %195 = vsyncpa [#allocation3], 1 }
 0x173   :  { %196 = vsyncpa [#allocation6], 1 }
 0x174   :  { %197 = vsyncpa [#allocation4], 1 }
 0x175   :  { %198 = vsyncpa [#allocation9], 1 }

</bundles_post_ra>
